<compile_context>
chip_gen: v7x
topology: tpu7x:2x2x1
jax: 0.10.0
libtpu: 0.0.40
codegen_flags: <defaults>
</compile_context>

<pallas_src>
import functools

import jax
import jax.numpy as jnp
import numpy as np
from jax.experimental import pallas as pl
from jax.experimental.pallas import tpu as pltpu

_BF16 = jnp.bfloat16
_F32 = jnp.float32


# ---------------------------------------------------------------------------
# Pass 1: fused Q/K/V 1x1-conv projections (one stacked weight DMA).
# ---------------------------------------------------------------------------
def _qkv_proj_kernel(w_ref, b_ref, q_ref, k_ref, v_ref, out_ref, *, d_model):
    # w_ref: (3, d, d) bf16 ; b_ref: (3, d, 1) f32 ; q/k/v_ref: (1, d, ts) bf16
    # out_ref: (1, 3*d, ts) bf16  (rows [0:d]=Q*scale, [d:2d]=K, [2d:3d]=V)
    for i, x_ref in enumerate((q_ref, k_ref, v_ref)):
        y = jnp.dot(w_ref[i], x_ref[0], preferred_element_type=_F32) + b_ref[i]
        out_ref[0, i * d_model:(i + 1) * d_model, :] = y.astype(out_ref.dtype)


# ---------------------------------------------------------------------------
# Pass 2: flash-style attention + fused merge projection.
#   grid = (batch, query tiles, key tiles); the key axis is the reduction.
# ---------------------------------------------------------------------------
def _flash_attn_kernel(wm_ref, bm_ref, q_ref, k_ref, v_ref, out_ref,
                       m_scr, l_scr, acc_scr, *,
                       num_heads, head_dim, seq_len, n_pad, tk):
    ki = pl.program_id(2)
    nk = pl.num_programs(2)
    d_model = num_heads * head_dim
    tq = q_ref.shape[-1]

    @pl.when(ki == 0)
    def _():
        m_scr[...] = jnp.full_like(m_scr, -jnp.inf)
        l_scr[...] = jnp.zeros_like(l_scr)
        acc_scr[...] = jnp.zeros_like(acc_scr)

    # Heads are contiguous channel blocks (weights pre-permuted in the wrapper).
    qh = q_ref[0].reshape(num_heads, head_dim, tq)          # bf16
    kh = k_ref[0].reshape(num_heads, head_dim, tk)
    vh = v_ref[0].reshape(num_heads, head_dim, tk)

    # s[h, m, n] = sum_d kh[h, d, m] * qh[h, d, n]   (keys on sublanes,
    # queries on lanes) -- the Q scale is already folded into the projection.
    s = jax.lax.dot_general(kh, qh, (((1,), (1,)), ((0,), (0,))),
                            preferred_element_type=_F32)    # (H, tk, tq)

    if n_pad != seq_len:
        # Padded key rows carry the projection bias -> must be masked (in f32).
        key_idx = jax.lax.broadcasted_iota(jnp.int32, (1, tk, 1), 1) + ki * tk
        s = jnp.where(key_idx < seq_len, s, -1e30)

    # Online softmax over the key axis (axis 1).
    m_prev = m_scr[...]                                      # (H, 1, tq)
    m_new = jnp.maximum(m_prev, jnp.max(s, axis=1, keepdims=True))
    alpha = jnp.exp(m_prev - m_new)
    p = jnp.exp(s - m_new)                                   # (H, tk, tq) f32

    l_scr[...] = alpha * l_scr[...] + jnp.sum(p, axis=1, keepdims=True)
    # acc[h, d, n] += sum_m vh[h, d, m] * p[h, m, n]
    pv = jax.lax.dot_general(vh, p.astype(_BF16),
                             (((2,), (1,)), ((0,), (0,))),
                             preferred_element_type=_F32)    # (H, hd, tq)
    acc_scr[...] = alpha * acc_scr[...] + pv
    m_scr[...] = m_new

    @pl.when(ki == nk - 1)
    def _():
        inv_l = pl.reciprocal(l_scr[...], approx=True)       # EUP slot
        x = (acc_scr[...] * inv_l).reshape(d_model, tq).astype(_BF16)
        out = jnp.dot(wm_ref[...], x, preferred_element_type=_F32) + bm_ref[...]
        out_ref[0] = out.astype(out_ref.dtype)


# ---------------------------------------------------------------------------
# Wrapper
# ---------------------------------------------------------------------------
def _vmem_capacity_bytes():
    try:
        return int(getattr(pltpu.get_tpu_info(), "vmem_capacity_bytes",
                           128 * 1024 * 1024))
    except Exception:
        return 128 * 1024 * 1024


def _pick_tile(n_pad, cap):
    """Largest multiple of 128 that divides n_pad and is <= cap."""
    t = min(cap, n_pad)
    while n_pad % t:
        t -= 128
    return t


def multi_headed_attention(q, k, v, params, num_heads, *, trim=True):
    """q, k, v: (B, d_model, N) float32. params: head-permuted weights.

    Returns (B, d_model, N) if trim else the padded (B, d_model, n_pad) buffer
    (columns past N are garbage) to avoid an extra HBM slice pass.
    """
    B, d_model, N = q.shape
    head_dim = d_model // num_heads
    out_dtype = q.dtype
    wq, bq, wk, bk, wv, bv, wm, bm = params

    # Per-generation sizing (v7x: 64 MiB VMEM/TC; v5e/v6e: 128 MiB).
    vmem_cap = _vmem_capacity_bytes()
    vmem_limit = int(min(vmem_cap * 3 // 4, 100 * 1024 * 1024))
    if vmem_cap >= 128 * 1024 * 1024:          # v5e / v6e
        tq_cap, tk_cap, ts_cap = 512, 1024, 512
    else:                                       # v7x
        tq_cap, tk_cap, ts_cap = 256, 512, 512

    # Lane-dense padding of the sequence axis.
    n_pad = ((N + 127) // 128) * 128
    pad = n_pad - N
    if pad:
        cfg = ((0, 0), (0, 0), (0, pad))
        q, k, v = jnp.pad(q, cfg), jnp.pad(k, cfg), jnp.pad(v, cfg)

    tq = _pick_tile(n_pad, tq_cap)
    tk = _pick_tile(n_pad, tk_cap)
    ts = _pick_tile(n_pad, ts_cap)

    # bf16 operands for the MXU; biases stay f32 (added after f32 accumulation).
    q, k, v = q.astype(_BF16), k.astype(_BF16), v.astype(_BF16)
    scale = 1.0 / (head_dim ** 0.5)
    # Fold 1/sqrt(head_dim) into the Q projection; stack Q/K/V weights so the
    # projection pass issues a single weight DMA.
    wqkv = jnp.stack([wq * scale, wk, wv], axis=0).astype(_BF16)   # (3, d, d)
    bqkv = jnp.stack([bq * scale, bk, bv], axis=0).astype(_F32)    # (3, d, 1)
    wm = wm.astype(_BF16)
    bm = bm.astype(_F32)

    const_kw = dict(pipeline_mode=pl.Buffered(1))   # constant blocks: 1 buffer

    # --- pass 1: fused Q/K/V projections ----------------------------------
    x_spec = pl.BlockSpec((1, d_model, ts), lambda b, t: (b, 0, t))
    qkv = pl.pallas_call(
        functools.partial(_qkv_proj_kernel, d_model=d_model),
        out_shape=jax.ShapeDtypeStruct((B, 3 * d_model, n_pad), _BF16),
        grid=(B, n_pad // ts),
        in_specs=[
            pl.BlockSpec((3, d_model, d_model), lambda b, t: (0, 0, 0), **const_kw),
            pl.BlockSpec((3, d_model, 1), lambda b, t: (0, 0, 0), **const_kw),
            x_spec, x_spec, x_spec,
        ],
        out_specs=pl.BlockSpec((1, 3 * d_model, ts), lambda b, t: (b, 0, t)),
        compiler_params=pltpu.CompilerParams(
            dimension_semantics=("parallel", "parallel"),
            vmem_limit_bytes=vmem_limit),
    )(wqkv, bqkv, q, k, v)

    # --- pass 2: flash attention + merge -----------------------------------
    kernel = functools.partial(
        _flash_attn_kernel, num_heads=num_heads, head_dim=head_dim,
        seq_len=N, n_pad=n_pad, tk=tk)

    out = pl.pallas_call(
        kernel,
        out_shape=jax.ShapeDtypeStruct((B, d_model, n_pad), _F32),
        grid=(B, n_pad // tq, n_pad // tk),
        in_specs=[
            pl.BlockSpec((d_model, d_model), lambda b, qi, ki: (0, 0), **const_kw),
            pl.BlockSpec((d_model, 1), lambda b, qi, ki: (0, 0), **const_kw),
            # The stacked projection output is passed three times; the channel
            # block index (0/1/2) selects the Q / K / V rows.
            pl.BlockSpec((1, d_model, tq), lambda b, qi, ki: (b, 0, qi)),
            pl.BlockSpec((1, d_model, tk), lambda b, qi, ki: (b, 1, ki)),
            pl.BlockSpec((1, d_model, tk), lambda b, qi, ki: (b, 2, ki)),
        ],
        out_specs=pl.BlockSpec((1, d_model, tq), lambda b, qi, ki: (b, 0, qi)),
        scratch_shapes=[
            pltpu.VMEM((num_heads, 1, tq), _F32),           # running max
            pltpu.VMEM((num_heads, 1, tq), _F32),           # running sum
            pltpu.VMEM((num_heads, head_dim, tq), _F32),    # output accumulator
        ],
        compiler_params=pltpu.CompilerParams(
            dimension_semantics=("parallel", "parallel", "arbitrary"),
            vmem_limit_bytes=vmem_limit),
    )(wm, bm, qkv, qkv, qkv)

    if trim:
        out = out[:, :, :N]
    return out.astype(out_dtype)


# ---------------------------------------------------------------------------
# Pure-JAX replica of the PyTorch forward (correctness check only).
# ---------------------------------------------------------------------------
def reference(q, k, v, Wq, bq, Wk, bk, Wv, bv, Wm, bm, num_heads):
    B, d_model, N = q.shape
    dim = d_model // num_heads

    def conv1x1(W, b, x):
        return jnp.einsum('oc,bcn->bon', W, x) + b[None, :, None]

    qp = conv1x1(Wq, bq, q).reshape(B, dim, num_heads, N)
    kp = conv1x1(Wk, bk, k).reshape(B, dim, num_heads, N)
    vp = conv1x1(Wv, bv, v).reshape(B, dim, num_heads, N)
    scores = jnp.einsum('bdhn,bdhm->bhnm', qp, kp) / dim ** 0.5
    prob = jax.nn.softmax(scores, axis=-1)
    x = jnp.einsum('bhnm,bdhm->bdhn', prob, vp)
    return conv1x1(Wm, bm, x.reshape(B, d_model, N))


if __name__ == "__main__":
    # head_dim = 16 -> aligned with the bf16 sublane pack, so the per-head
    # reshape inside the kernel is layout-free.
    B, num_heads, d_model, N = 2, 4, 64, 16
    head_dim = d_model // num_heads

    key = jax.random.PRNGKey(0)
    keys = jax.random.split(key, 11)

    # Conv1d(d_model, d_model, kernel_size=1) weights -> (d_model, d_model)
    Wq = jax.random.normal(keys[0], (d_model, d_model), _F32) * 0.1
    bq = jax.random.normal(keys[1], (d_model,), _F32) * 0.1
    Wk = jax.random.normal(keys[2], (d_model, d_model), _F32) * 0.1
    bk = jax.random.normal(keys[3], (d_model,), _F32) * 0.1
    Wv = jax.random.normal(keys[4], (d_model, d_model), _F32) * 0.1
    bv = jax.random.normal(keys[5], (d_model,), _F32) * 0.1
    Wm = jax.random.normal(keys[6], (d_model, d_model), _F32) * 0.1
    bm = jax.random.normal(keys[7], (d_model,), _F32) * 0.1

    q = jax.random.normal(keys[8], (B, d_model, N), _F32)
    k = jax.random.normal(keys[9], (B, d_model, N), _F32)
    v = jax.random.normal(keys[10], (B, d_model, N), _F32)

    # Permutation so head h occupies contiguous rows [h*head_dim:(h+1)*head_dim]
    # perm[h*head_dim + d] = d*num_heads + h   (matches .view(B, dim, H, N))
    perm = jnp.arange(d_model).reshape(head_dim, num_heads).T.reshape(-1)
    params = (
        Wq[perm, :], bq[perm].reshape(d_model, 1),
        Wk[perm, :], bk[perm].reshape(d_model, 1),
        Wv[perm, :], bv[perm].reshape(d_model, 1),
        Wm[:, perm], bm.reshape(d_model, 1),
    )

    # trim=False: keep the padded buffer (no extra device slice pass); the
    # valid columns are compared on the host.
    out = multi_headed_attention(q, k, v, params, num_heads, trim=False)
    out = jax.block_until_ready(out)

    ref = reference(q, k, v, Wq, bq, Wk, bk, Wv, bv, Wm, bm, num_heads)
    np.testing.assert_allclose(np.asarray(out)[:, :, :N], np.asarray(ref),
                               rtol=2e-2, atol=2e-2)

    print("KERNEL_OK")
</pallas_src>

<mosaic_0001>
module attributes {stable_mosaic.version = 11 : i64} {
  func.func @_qkv_proj_kernel(%arg0: i32, %arg1: i32, %arg2: memref<3x64x64xbf16, #tpu.memory_space<vmem>>, %arg3: memref<3x64x1xf32, #tpu.memory_space<vmem>>, %arg4: memref<1x64x128xbf16, #tpu.memory_space<vmem>>, %arg5: memref<1x64x128xbf16, #tpu.memory_space<vmem>>, %arg6: memref<1x64x128xbf16, #tpu.memory_space<vmem>>, %arg7: memref<1x192x128xbf16, #tpu.memory_space<vmem>>) attributes {dimension_semantics = [#tpu.dimension_semantics<parallel>, #tpu.dimension_semantics<parallel>], iteration_bounds = array<i64: 2, 1>, scalar_prefetch = 0 : i64, scratch_operands = 0 : i64, tpu.core_type = #tpu.core_type<tc>, window_params = [{pipeline_mode = #tpu.pipeline_mode<synchronous>, transform_indices = @transform_0, window_bounds = array<i64: 3, 64, 64>}, {pipeline_mode = #tpu.pipeline_mode<synchronous>, transform_indices = @transform_1, window_bounds = array<i64: 3, 64, 1>}, {transform_indices = @transform_2, window_bounds = array<i64: 1, 64, 128>}, {transform_indices = @transform_3, window_bounds = array<i64: 1, 64, 128>}, {transform_indices = @transform_4, window_bounds = array<i64: 1, 64, 128>}, {transform_indices = @transform_5, window_bounds = array<i64: 1, 192, 128>}]} {
    %c0 = arith.constant 0 : index
    %c0_0 = arith.constant 0 : index
    %c0_1 = arith.constant 0 : index
    %0 = vector.load %arg2[%c0, %c0_0, %c0_1] : memref<3x64x64xbf16, #tpu.memory_space<vmem>>, vector<1x64x64xbf16>
    %1 = vector.shape_cast %0 : vector<1x64x64xbf16> to vector<64x64xbf16>
    %c0_2 = arith.constant 0 : index
    %c0_3 = arith.constant 0 : index
    %c0_4 = arith.constant 0 : index
    %2 = vector.load %arg4[%c0_2, %c0_3, %c0_4] : memref<1x64x128xbf16, #tpu.memory_space<vmem>>, vector<1x64x128xbf16>
    %3 = vector.shape_cast %2 : vector<1x64x128xbf16> to vector<64x128xbf16>
    %cst = arith.constant dense<0.000000e+00> : vector<64x128xf32>
    %4 = tpu.matmul %1, %3, %cst {dimension_numbers = #tpu.dot_dimension_numbers<[1], [0], [0], [1], [0, 0, 1, 1], [], []>} : vector<64x64xbf16>, vector<64x128xbf16>, vector<64x128xf32> -> vector<64x128xf32>
    %c0_5 = arith.constant 0 : index
    %c0_6 = arith.constant 0 : index
    %c0_7 = arith.constant 0 : index
    %5 = vector.load %arg3[%c0_5, %c0_6, %c0_7] : memref<3x64x1xf32, #tpu.memory_space<vmem>>, vector<1x64x1xf32>
    %6 = vector.shape_cast %5 : vector<1x64x1xf32> to vector<64x1xf32>
    %7 = vector.broadcast %6 : vector<64x1xf32> to vector<64x128xf32>
    %8 = arith.addf %4, %7 : vector<64x128xf32>
    %9 = arith.truncf %8 : vector<64x128xf32> to vector<64x128xbf16>
    %c0_8 = arith.constant 0 : index
    %c0_9 = arith.constant 0 : index
    %c0_10 = arith.constant 0 : index
    %10 = vector.load %arg7[%c0_8, %c0_9, %c0_10] : memref<1x192x128xbf16, #tpu.memory_space<vmem>>, vector<1x64x128xbf16>
    %11 = vector.shape_cast %10 : vector<1x64x128xbf16> to vector<64x128xbf16>
    %12 = vector.shape_cast %9 : vector<64x128xbf16> to vector<1x64x128xbf16>
    tpu.vector_store %arg7[%c0_8, %c0_9, %c0_10], %12 {strides = array<i32>} : memref<1x192x128xbf16, #tpu.memory_space<vmem>>, vector<1x64x128xbf16>,
    %c1 = arith.constant 1 : index
    %c0_11 = arith.constant 0 : index
    %c0_12 = arith.constant 0 : index
    %13 = vector.load %arg2[%c1, %c0_11, %c0_12] : memref<3x64x64xbf16, #tpu.memory_space<vmem>>, vector<1x64x64xbf16>
    %14 = vector.shape_cast %13 : vector<1x64x64xbf16> to vector<64x64xbf16>
    %c0_13 = arith.constant 0 : index
    %c0_14 = arith.constant 0 : index
    %c0_15 = arith.constant 0 : index
    %15 = vector.load %arg5[%c0_13, %c0_14, %c0_15] : memref<1x64x128xbf16, #tpu.memory_space<vmem>>, vector<1x64x128xbf16>
    %16 = vector.shape_cast %15 : vector<1x64x128xbf16> to vector<64x128xbf16>
    %cst_16 = arith.constant dense<0.000000e+00> : vector<64x128xf32>
    %17 = tpu.matmul %14, %16, %cst_16 {dimension_numbers = #tpu.dot_dimension_numbers<[1], [0], [0], [1], [0, 0, 1, 1], [], []>} : vector<64x64xbf16>, vector<64x128xbf16>, vector<64x128xf32> -> vector<64x128xf32>
    %c1_17 = arith.constant 1 : index
    %c0_18 = arith.constant 0 : index
    %c0_19 = arith.constant 0 : index
    %18 = vector.load %arg3[%c1_17, %c0_18, %c0_19] : memref<3x64x1xf32, #tpu.memory_space<vmem>>, vector<1x64x1xf32>
    %19 = vector.shape_cast %18 : vector<1x64x1xf32> to vector<64x1xf32>
    %20 = vector.broadcast %19 : vector<64x1xf32> to vector<64x128xf32>
    %21 = arith.addf %17, %20 : vector<64x128xf32>
    %22 = arith.truncf %21 : vector<64x128xf32> to vector<64x128xbf16>
    %c0_20 = arith.constant 0 : index
    %c64 = arith.constant 64 : index
    %c0_21 = arith.constant 0 : index
    %23 = vector.load %arg7[%c0_20, %c64, %c0_21] : memref<1x192x128xbf16, #tpu.memory_space<vmem>>, vector<1x64x128xbf16>
    %24 = vector.shape_cast %23 : vector<1x64x128xbf16> to vector<64x128xbf16>
    %25 = vector.shape_cast %22 : vector<64x128xbf16> to vector<1x64x128xbf16>
    tpu.vector_store %arg7[%c0_20, %c64, %c0_21], %25 {strides = array<i32>} : memref<1x192x128xbf16, #tpu.memory_space<vmem>>, vector<1x64x128xbf16>,
    %c2 = arith.constant 2 : index
    %c0_22 = arith.constant 0 : index
    %c0_23 = arith.constant 0 : index
    %26 = vector.load %arg2[%c2, %c0_22, %c0_23] : memref<3x64x64xbf16, #tpu.memory_space<vmem>>, vector<1x64x64xbf16>
    %27 = vector.shape_cast %26 : vector<1x64x64xbf16> to vector<64x64xbf16>
    %c0_24 = arith.constant 0 : index
    %c0_25 = arith.constant 0 : index
    %c0_26 = arith.constant 0 : index
    %28 = vector.load %arg6[%c0_24, %c0_25, %c0_26] : memref<1x64x128xbf16, #tpu.memory_space<vmem>>, vector<1x64x128xbf16>
    %29 = vector.shape_cast %28 : vector<1x64x128xbf16> to vector<64x128xbf16>
    %cst_27 = arith.constant dense<0.000000e+00> : vector<64x128xf32>
    %30 = tpu.matmul %27, %29, %cst_27 {dimension_numbers = #tpu.dot_dimension_numbers<[1], [0], [0], [1], [0, 0, 1, 1], [], []>} : vector<64x64xbf16>, vector<64x128xbf16>, vector<64x128xf32> -> vector<64x128xf32>
    %c2_28 = arith.constant 2 : index
    %c0_29 = arith.constant 0 : index
    %c0_30 = arith.constant 0 : index
    %31 = vector.load %arg3[%c2_28, %c0_29, %c0_30] : memref<3x64x1xf32, #tpu.memory_space<vmem>>, vector<1x64x1xf32>
    %32 = vector.shape_cast %31 : vector<1x64x1xf32> to vector<64x1xf32>
    %33 = vector.broadcast %32 : vector<64x1xf32> to vector<64x128xf32>
    %34 = arith.addf %30, %33 : vector<64x128xf32>
    %35 = arith.truncf %34 : vector<64x128xf32> to vector<64x128xbf16>
    %c0_31 = arith.constant 0 : index
    %c128 = arith.constant 128 : index
    %c0_32 = arith.constant 0 : index
    %36 = vector.load %arg7[%c0_31, %c128, %c0_32] : memref<1x192x128xbf16, #tpu.memory_space<vmem>>, vector<1x64x128xbf16>
    %37 = vector.shape_cast %36 : vector<1x64x128xbf16> to vector<64x128xbf16>
    %38 = vector.shape_cast %35 : vector<64x128xbf16> to vector<1x64x128xbf16>
    tpu.vector_store %arg7[%c0_31, %c128, %c0_32], %38 {strides = array<i32>} : memref<1x192x128xbf16, #tpu.memory_space<vmem>>, vector<1x64x128xbf16>,
    return
  }
  func.func @transform_0(%arg0: i32, %arg1: i32) -> (i32, i32, i32) {
    %c0_i32 = arith.constant 0 : i32
    %c0_i32_0 = arith.constant 0 : i32
    %c0_i32_1 = arith.constant 0 : i32
    %c0_i32_2 = arith.constant 0 : i32
    return %c0_i32, %c0_i32_0, %c0_i32_1 : i32, i32, i32
  }
  func.func @transform_1(%arg0: i32, %arg1: i32) -> (i32, i32, i32) {
    %c0_i32 = arith.constant 0 : i32
    %c0_i32_0 = arith.constant 0 : i32
    %c0_i32_1 = arith.constant 0 : i32
    %c0_i32_2 = arith.constant 0 : i32
    return %c0_i32, %c0_i32_0, %c0_i32_1 : i32, i32, i32
  }
  func.func @transform_2(%arg0: i32, %arg1: i32) -> (i32, i32, i32) {
    %c0_i32 = arith.constant 0 : i32
    %c0_i32_0 = arith.constant 0 : i32
    return %arg0, %c0_i32, %arg1 : i32, i32, i32
  }
  func.func @transform_3(%arg0: i32, %arg1: i32) -> (i32, i32, i32) {
    %c0_i32 = arith.constant 0 : i32
    %c0_i32_0 = arith.constant 0 : i32
    return %arg0, %c0_i32, %arg1 : i32, i32, i32
  }
  func.func @transform_4(%arg0: i32, %arg1: i32) -> (i32, i32, i32) {
    %c0_i32 = arith.constant 0 : i32
    %c0_i32_0 = arith.constant 0 : i32
    return %arg0, %c0_i32, %arg1 : i32, i32, i32
  }
  func.func @transform_5(%arg0: i32, %arg1: i32) -> (i32, i32, i32) {
    %c0_i32 = arith.constant 0 : i32
    %c0_i32_0 = arith.constant 0 : i32
    return %arg0, %c0_i32, %arg1 : i32, i32, i32
  }
}

</mosaic_0001>

<bundles_post_ra>
// kernel: tpu_custom_call.1
= control target key start
LH: loop header
LB: loop body
LE: loop exit
PB: predicated region body
PF: predicated region fallthrough
CT: control target
= control target key end

     0   :  { %s2268_s0 = inlined_call_operand.hbm [shape: bf16[3,64,64], index: 0, kind: input, shape index: {}]   ;;  %s2269_s1 = inlined_call_operand.hbm [shape: f32[3,64,1], index: 1, kind: input, shape index: {}]   ;;  %s2270_s2 = inlined_call_operand.hbm [shape: bf16[2,64,128], index: 2, kind: input, shape index: {}]   ;;  %s2271_s3 = inlined_call_operand.hbm [shape: bf16[2,64,128], index: 3, kind: input, shape index: {}]   ;;  %s2272_s4 = inlined_call_operand.hbm [shape: bf16[2,64,128], index: 4, kind: input, shape index: {}]   ;;  %s2273_s5 = inlined_call_operand.hbm [shape: bf16[2,192,128], index: 5, kind: output, shape index: {}]  }
   0x1   :  { %2293 = sst [smem:[#allocation19_spill]] %s2268_s0 }
   0x2   :  { %2294 = sst [smem:[#allocation20_spill]] %s2270_s2 }
   0x3   :  { %2295 = sst [smem:[#allocation21_spill]] %s2273_s5 }
   0x4   :  { %10 = vsyncpa [#allocation3], 0 }
   0x5   :  { %11 = vsyncpa [#allocation6], 0 }
   0x6   :  { %12 = vsyncpa [#allocation4], 0 }
   0x7   :  { %14 = vsyncpa [#allocation4 + $0x1], 0  ;;  %s1882_s18 = smov 0   ;;  %s1884_s19 = smov 0  }
   0x8   :  { %s1886_s20 = smov 0   ;;  %s1888_s21 = smov 0  }
   0x9   :  { %s1890_s22 = smov 0   ;;  %s1892_s23 = smov 0  }
   0xa LB: > { %2296 = sst [smem:[#allocation15_spill]] %s1817_s18  ;;  %s1913_s24 = sadd.s32 4294967295, %s1837_s23   ;;  %s1837_s23 = sphi %s1892_s23, %s20_s23   ;;  %s1833_s22 = sphi %s1890_s22, %s2332_s22   ;;  %s1829_s21 = sphi %s1888_s21, %s2331_s21   ;;  %s1825_s20 = sphi %s1886_s20, %s2335_s20   ;;  %s1821_s19 = sphi %s1884_s19, %s2334_s19   ;;  %s1817_s18 = sphi %s1882_s18, %s2333_s18  }
   0xb   : > { %2297 = sst [smem:[#allocation16_spill]] %s1833_s22  ;;  %s1212_s25 = sadd.s32 4294967294, %s1837_s23  }
   0xc   : > { %p90_p0 = scmp.ne.s32.totalorder %s1825_s20, %s1821_s19  ;;  %p91_p1 = scmp.eq.s32.totalorder %s1837_s23, 0 }
   0xd   : > { %p96_p2 = scmp.ne.s32.totalorder %s1821_s19, %s1817_s18  ;;  %p2274_p3 = scmp.eq.s32.totalorder %s1913_s24, 0 }
   0xe   : > { %p178_p4 = scmp.eq.s32.totalorder %s1913_s24, 1  ;;  %p1924_p5 = por %p91_p1, %p90_p0 }
   0xf   : > { %p184_p6 = scmp.eq.s32.totalorder %s1212_s25, 1  ;;  %p1930_p7 = por %p2274_p3, %p96_p2 }
  0x10   : > { %p1934_p8 = por %p178_p4, %p90_p0  ;;  %p1213_p10 = scmp.ge.s32.totalorder %s1837_s23, 1 }
  0x11   : > { %s2299_s28 = scalar_select %p1930_p7, 1, 0 }
  0x12   : > { %s2300_s29 = scalar_select %p1934_p8, 1, 0 }
  0x13   : > { %p1938_p9 = por %p184_p6, %p96_p2  ;;  %p191_p11 = scmp.lt.s32.totalorder %s1837_s23, 3 }
  0x14   : > { %s1839_s7 = smov [#allocation2]   ;;  %p1514_p1 = scmp.lt.s32.totalorder %s1837_s23, 2 }
  0x15   : > { %s2301_s30 = scalar_select %p1938_p9, 1, 0 }
  0x16   : > { %p1944_p12 = pnand %p1213_p10, %p191_p11  ;;  %s203_s8 = sshll.u32 %s1839_s7, 4  ;;  %s1948_s8 = int_to_ptr.vmem [resolvable:$true] %s203_s8 }
  0x17   : > { %2302 = sst [smem:[#allocation17_spill]] %s2301_s30  ;;  %p1962_p4 = pnand %p1514_p1, %p1924_p5 }
  0x18   : > { %s2303_s6 = scalar_select %p1944_p12, 1, 0 }
  0x19   : > { %p1491_p13 = pneg %p1944_p12  ;;  %s32_s11 = sadd.s32 1, %s1833_s22 }
  0x1a   : > { %s2305_s10 = scalar_select %p1962_p4, 1, 0 }
  0x1b   : > { %p1956_p2 = pnand %p1491_p13, %p2274_p3  ;;  %p1967_p6 = scmp.ge.s32.totalorder %s32_s11, 2 }
  0x1c   : > { %s2307_s0 = sld [smem:[#allocation19_spill]] }
  0x1d   : > { %s2304_s9 = scalar_select %p1956_p2, 1, 0 }
  0x1e   : > { %p2285_p11 = pneg %p1956_p2 }
  0x22   : > { %s1601_s15 = scalar_lea.hbm %s2307_s0, 1536 }
  0x23   : > { %p1602_p10 = scmp.ne.s32.totalorder %s2307_s0, %s1601_s15  ;;  %p1608_p1 = scmp.lt.u32.totalorder %s1601_s15, %s2307_s0 }
  0x25   : > { %p1604_p5 = pnand %p2285_p11, %p1602_p10 }
  0x27   : > { %p1605_p13 = pneg %p1604_p5 }
  0x29   : > { %p1610_p0 = pnand %p1608_p1, %p1605_p13 }
  0x2b   : > { %1613 = shalt.err (!%p1610_p0)
}
  0x2c   : > { %s1614_s7 = scalar_lea.vmem %s1948_s8, 1536  ;;  %p1622_p7 = scmp.lt.s32.totalorder %s1948_s8, %s1948_s8 }
  0x2d   : > { %p1615_p3 = scmp.ne.s32.totalorder %s1948_s8, %s1614_s7  ;;  %p1623_p10 = scmp.lt.s32.totalorder %s1614_s7, %s1614_s7 }
  0x2f   : > { %p1617_p9 = pnand %p1615_p3, %p2285_p11  ;;  %p1624_p5 = por %p1623_p10, %p1622_p7 }
  0x31   : > { %p1618_p8 = pneg %p1617_p9 }
  0x33   : > { %p1625_p12 = pnand %p1624_p5, %p1618_p8 }
  0x35   : > { %1628 = shalt.err (!%p1625_p12)
}
  0x36   : > { %s2281_s13 = smov 64   ;;  %s2283_s14 = smov 4  }
  0x37   : > { %1494 = dma.hbm_to_vmem [thread:$0]  (!%p1956_p2), %s2307_s0, 1536, %s1948_s8, [#allocation3], %s2281_s13, %s2281_s13, %s2283_s14  }
  0x38   : > { %s230_s17 = sand.u32 1, %s1837_s23   ;;  %s2337_s11 = smov (%p1967_p6, %s32_s11), 0 }
  0x39   : > { %2308 = sst [smem:[#allocation18_spill]] %s2337_s11  ;;  %s232_s25 = sand.u32 1, %s1825_s20  }
  0x3a   : > { %s78_s27 = ssub.s32 %s1833_s22, %s2337_s11  ;;  %s2009_s7 = sshll.u32 %s232_s25, 5 }
  0x3b   : > { %p81_p3 = scmp.eq.s32.totalorder %s78_s27, 0  ;;  %s2012_s26 = sshll.u32 %s1833_s22, 9 }
  0x3c   : > { %s234_s30 = scalar_lea.vmem [#allocation7], %s2009_s7  ;;  %s2309_s5 = sadd.s32 1, %s1825_s20 }
  0x3d   : > { %s242_s18 = sshll.u32 %s234_s30, 4  ;;  %s2310_s2 = sld [smem:[#allocation20_spill]]  ;;  %s2026_s18 = int_to_ptr.vmem [resolvable:$true] %s242_s18 }
  0x3e   : > { %s2018_s15 = scalar_select %p81_p3, %s1825_s20, %s2309_s5  }
  0x3f   : > { %s2028_s25 = scalar_lea.sflag [#allocation3], %s230_s17  ;;  %p2034_p8 = pneg %p1962_p4 }
  0x41   : > { %s2311_s30 = scalar_select %p2034_p8, 1, 0 }
  0x43   : > { %s2024_s12 = scalar_lea.hbm %s2310_s2, %s2012_s26  ;;  %s1634_s16 = scalar_lea.hbm %s2310_s2, 1024 }
  0x44   : > { %s1629_s27 = scalar_lea.hbm %s2024_s12, 512  ;;  %p1635_p0 = scmp.lt.u32.totalorder %s2024_s12, %s2310_s2 }
  0x45   : > { %p1630_p7 = scmp.ne.s32.totalorder %s2024_s12, %s1629_s27  ;;  %p1636_p6 = scmp.lt.u32.totalorder %s1634_s16, %s1629_s27 }
  0x46   : > { %p1638_p1 = scmp.lt.u32.totalorder %s1629_s27, %s2024_s12 }
  0x47   : > { %p1632_p9 = pnand %p2034_p8, %p1630_p7  ;;  %p1637_p13 = por %p1636_p6, %p1635_p0 }
  0x49   : > { %p1633_p12 = pneg %p1632_p9  ;;  %p1639_p10 = por %p1638_p1, %p1637_p13 }
  0x4b   : > { %p1640_p5 = pnand %p1639_p10, %p1633_p12 }
  0x4d   : > { %1643 = shalt.err (!%p1640_p5)
}
  0x4e   : > { %s1644_s17 = scalar_lea.vmem %s2026_s18, 512  ;;  %s1842_s5 = smov [#allocation7]  }
  0x4f   : > { %p1645_p3 = scmp.ne.s32.totalorder %s2026_s18, %s1644_s17  ;;  %s1649_s8 = sshll.u32 %s1842_s5, 4  ;;  %s1650_s8 = int_to_ptr.vmem [resolvable:$false] %s1649_s8 }
  0x50   : > { %s1651_s13 = scalar_lea.vmem %s1650_s8, 1024  ;;  %p1652_p11 = scmp.lt.s32.totalorder %s2026_s18, %s1650_s8 }
  0x51   : > { %p1647_p7 = pnand %p1645_p3, %p2034_p8  ;;  %p1653_p2 = scmp.lt.s32.totalorder %s1651_s13, %s1644_s17 }
  0x53   : > { %p1648_p9 = pneg %p1647_p7  ;;  %p1654_p0 = por %p1653_p2, %p1652_p11 }
  0x55   : > { %p1655_p6 = pnand %p1654_p0, %p1648_p9 }
  0x57   : > { %1658 = shalt.err (!%p1655_p6)
}
  0x58   : > { %s2312_s14 = smov 4   ;;  %s2313_s27 = smov 64  }
  0x59   : > { %1501 = dma.hbm_to_vmem [thread:$0]  (!%p1962_p4), %s2024_s12, 512, %s2026_s18, %s2028_s25, %s2313_s27, %s2313_s27, %s2312_s14  }
  0x5a   : > { %s2065_s8 = scalar_lea.hbm %s2271_s3, %s2012_s26  ;;  %s256_s17 = scalar_lea.vmem [#allocation8], %s2009_s7 }
  0x5b   : > { %s264_s13 = sshll.u32 %s256_s17, 4  ;;  %s1843_s0 = smov [#allocation5]   ;;  %s2068_s13 = int_to_ptr.vmem [resolvable:$true] %s264_s13 }
  0x5c   : > { %s2070_s2 = sshll.u32 %s1843_s0, 4  ;;  %s1659_s11 = scalar_lea.hbm %s2065_s8, 512  ;;  %s217_s2 = int_to_ptr.vmem [resolvable:$true] %s2070_s2 }
  0x5d   : > { %p1660_p2 = scmp.ne.s32.totalorder %s2065_s8, %s1659_s11  ;;  %s1664_s16 = scalar_lea.hbm %s2271_s3, 1024 }
  0x5e   : > { %p1665_p13 = scmp.lt.u32.totalorder %s2065_s8, %s2271_s3  ;;  %p1666_p1 = scmp.lt.u32.totalorder %s1664_s16, %s1659_s11 }
  0x5f   : > { %p1662_p11 = pnand %p1660_p2, %p2034_p8  ;;  %p1668_p5 = scmp.lt.u32.totalorder %s1659_s11, %s2065_s8 }
  0x60   : > { %p1667_p10 = por %p1666_p1, %p1665_p13 }
  0x61   : > { %p1663_p12 = pneg %p1662_p11 }
  0x62   : > { %p1669_p3 = por %p1668_p5, %p1667_p10 }
  0x64   : > { %p1670_p7 = pnand %p1669_p3, %p1663_p12 }
  0x66   : > { %1673 = shalt.err (!%p1670_p7)
}
  0x67   : > { %s1674_s0 = scalar_lea.vmem %s2068_s13, 512  ;;  %s1844_s17 = smov [#allocation8]  }
  0x68   : > { %p1675_p9 = scmp.ne.s32.totalorder %s2068_s13, %s1674_s0  ;;  %s1679_s18 = sshll.u32 %s1844_s17, 4  ;;  %s1680_s18 = int_to_ptr.vmem [resolvable:$false] %s1679_s18 }
  0x69   : > { %s1681_s22 = scalar_lea.vmem %s1680_s18, 1024  ;;  %p1682_p2 = scmp.lt.s32.totalorder %s2068_s13, %s1680_s18 }
  0x6a   : > { %p1677_p0 = pnand %p1675_p9, %p2034_p8  ;;  %p1683_p11 = scmp.lt.s32.totalorder %s1681_s22, %s1674_s0 }
  0x6c   : > { %p1678_p6 = pneg %p1677_p0  ;;  %p1684_p13 = por %p1683_p11, %p1682_p2 }
  0x6e   : > { %p1685_p1 = pnand %p1684_p13, %p1678_p6 }
  0x70   : > { %1688 = shalt.err (!%p1685_p1)
}
  0x71   : > { %1504 = dma.hbm_to_vmem [thread:$0]  (!%p1962_p4), %s2065_s8, 512, %s2068_s13, %s2028_s25, %s2313_s27, %s2313_s27, %s2312_s14  }
  0x72   : > { %s1689_s16 = scalar_lea.hbm %s2269_s1, 3072  ;;  %p2314_p10 = scmp.ne.s32.totalorder %s2304_s9, 0 }
  0x73   : > { %p1690_p12 = scmp.ne.s32.totalorder %s2269_s1, %s1689_s16  ;;  %p1696_p9 = scmp.lt.u32.totalorder %s1689_s16, %s2269_s1 }
  0x74   : > { %p2315_p5 = pneg %p2314_p10 }
  0x76   : > { %p1692_p3 = pnand %p1690_p12, %p2315_p5 }
  0x78   : > { %p1693_p7 = pneg %p1692_p3 }
  0x7a   : > { %p1698_p0 = pnand %p1696_p9, %p1693_p7 }
  0x7c   : > { %1701 = shalt.err (!%p1698_p0)
}
  0x7d   : > { %s1702_s8 = scalar_lea.vmem %s217_s2, 3072  ;;  %p2316_p2 = pmov %p2315_p5 }
  0x7e   : > { %p1703_p6 = scmp.ne.s32.totalorder %s217_s2, %s1702_s8  ;;  %p1710_p1 = scmp.lt.s32.totalorder %s217_s2, %s217_s2 }
  0x7f   : > { %p1711_p4 = scmp.lt.s32.totalorder %s1702_s8, %s1702_s8 }
  0x80   : > { %p1705_p11 = pnand %p1703_p6, %p2316_p2 }
  0x81   : > { %p1712_p8 = por %p1711_p4, %p1710_p1 }
  0x82   : > { %p1706_p13 = pneg %p1705_p11 }
  0x84   : > { %p1713_p5 = pnand %p1712_p8, %p1706_p13 }
  0x86   : > { %1716 = shalt.err (!%p1713_p5)
}
  0x87   : > { %s1845_s13 = smov 128   ;;  %s1846_s22 = smov 8  }
  0x88   : > { %1497 = dma.hbm_to_vmem [thread:$0]  (!%p2314_p10), %s2269_s1, 3072, %s217_s2, [#allocation6], %s1845_s13, %s1845_s13, %s1846_s22  }
  0x89   : > { %s2122_s0 = scalar_lea.hbm %s2272_s4, %s2012_s26  ;;  %s278_s17 = scalar_lea.vmem [#allocation9], %s2009_s7 }
  0x8a   : > { %s286_s18 = sshll.u32 %s278_s17, 4  ;;  %s1717_s8 = scalar_lea.hbm %s2122_s0, 512  ;;  %s2125_s18 = int_to_ptr.vmem [resolvable:$true] %s286_s18 }
  0x8b   : > { %p1718_p4 = scmp.ne.s32.totalorder %s2122_s0, %s1717_s8  ;;  %p2317_p8 = scmp.ne.s32.totalorder %s2311_s30, 0 }
  0x8c   : > { %s1722_s13 = scalar_lea.hbm %s2272_s4, 1024  ;;  %p1723_p10 = scmp.lt.u32.totalorder %s2122_s0, %s2272_s4 }
  0x8d   : > { %p1720_p12 = pnand %p1718_p4, %p2317_p8  ;;  %p1724_p7 = scmp.lt.u32.totalorder %s1722_s13, %s1717_s8 }
  0x8e   : > { %p1726_p0 = scmp.lt.u32.totalorder %s1717_s8, %s2122_s0 }
  0x8f   : > { %p1721_p3 = pneg %p1720_p12  ;;  %p1725_p9 = por %p1724_p7, %p1723_p10 }
  0x91   : > { %p1727_p6 = por %p1726_p0, %p1725_p9 }
  0x93   : > { %p1728_p2 = pnand %p1727_p6, %p1721_p3 }
  0x95   : > { %1731 = shalt.err (!%p1728_p2)
}
  0x96   : > { %s1732_s7 = scalar_lea.vmem %s2125_s18, 512  ;;  %s1847_s11 = smov [#allocation9]  }
  0x97   : > { %p1733_p11 = scmp.ne.s32.totalorder %s2125_s18, %s1732_s7  ;;  %s1737_s12 = sshll.u32 %s1847_s11, 4  ;;  %s1738_s12 = int_to_ptr.vmem [resolvable:$false] %s1737_s12 }
  0x98   : > { %s1739_s16 = scalar_lea.vmem %s1738_s12, 1024  ;;  %p1740_p5 = scmp.lt.s32.totalorder %s2125_s18, %s1738_s12 }
  0x99   : > { %p1735_p13 = pnand %p1733_p11, %p2317_p8  ;;  %p1741_p4 = scmp.lt.s32.totalorder %s1739_s16, %s1732_s7 }
  0x9b   : > { %p1736_p1 = pneg %p1735_p13  ;;  %p1742_p12 = por %p1741_p4, %p1740_p5 }
  0x9d   : > { %p1743_p10 = pnand %p1742_p12, %p1736_p1 }
  0x9f   : > { %1746 = shalt.err (!%p1743_p10)
}
  0xa0   : > { %p2318_p3 = scmp.ne.s32.totalorder %s2305_s10, 0  ;;  %p2319_p8 = scmp.ne.s32.totalorder %s2303_s6, 0 }
  0xa1   : > { %p2320_p7 = scmp.eq.s32.totalorder (!%p2319_p8), %s1913_s24, 0 }
  0xa2   : > { %1507 = dma.hbm_to_vmem [thread:$0]  (!%p2318_p3), %s2122_s0, 512, %s2125_s18, %s2028_s25, %s2313_s27, %s2313_s27, %s2312_s14  }
  0xa3   : > { %298 = sbr.rel (%p2319_p8) target bundleno = 447 (0x1bf), region = 40 }
  0xaa   : > { %1800 = dma.done.wait (%p2320_p7), [#allocation3], 1536   ;;  %p2321_p9 = pmov %p2320_p7 }
  0xab   : > { %p2322_p0 = pmov %p2320_p7 }
  0xac   : > { %1802 = vsyncadd (%p2321_p9), [#allocation3], 4294965760 }
  0xad   : > { %1804 = dma.done.wait (%p2322_p0), [#allocation6], 3072   ;;  %p2323_p6 = pmov %p2322_p0 }
  0xae   : > { %s308_s10 = sand.u32 1, %s1913_s24   ;;  %s2164_s25 = sand.u32 1, %s1821_s19  }
  0xaf   : > { %1806 = vsyncadd (%p2323_p6), [#allocation6], 4294964224  ;;  %s2167_s6 = sshll.u32 %s2164_s25, 5  ;;  %s309_s30 = scalar_lea.sflag [#allocation3], %s308_s10 }
  0xb0   : > { %s312_s14 = scalar_lea.vmem [#allocation7], %s2167_s6  ;;  %p2324_p2 = scmp.ne.s32.totalorder %s2299_s28, 0 }
  0xb2   : > { %1808 = dma.done.wait (%p2324_p2), %s309_s30, 1536  }
  0xb3   : > { %1810 = vsyncadd (%p2324_p2), %s309_s30, 4294965760  ;;  %v1848_v0 = vmov 0   ;;  %v1577_v1 = vld [vmem:[%s312_s14] sm:$0xff]   ;;  %s321_s27 = scalar_lea.vmem [#allocation8], %s2167_s6  ;;  %v1579_v3 = vld [vmem:[%s312_s14 + $0x8] sm:$0xff]   ;;  %vm476_vm0 = vcmask 523264  }
  0xb4   : > { %1576 = vset.pattern.permute.xlu1 %v1848_v0  ;;  %1575 = vset.pattern.permute.xlu0 %v1848_v0  ;;  %v1578_v2 = vld [vmem:[%s321_s27] sm:$0xff]   ;;  %v1580_v4 = vld [vmem:[%s321_s27 + $0x8] sm:$0xff]   ;;  %v1581_v5 = vld [vmem:[%s312_s14 + $0x10] sm:$0xff]   ;;  %s330_s24 = scalar_lea.vmem [#allocation9], %s2167_s6  ;;  %s1473_s28 = smul.u32 96, %s2164_s25 }
  0xb5   : > { %1417 = vmatprep.subr.bf16.mxu0 %v1577_v1  ;;  %1433 = vmatprep.subr.bf16.mxu1 %v1578_v2  ;;  %v1582_v6 = vld [vmem:[%s321_s27 + $0x10] sm:$0xff]   ;;  %v1583_v7 = vld [vmem:[%s312_s14 + $0x18] sm:$0xff]   ;;  %v1585_v9 = vld [vmem:[#allocation2] sm:$0xff]   ;;  %s1474_s0 = smul.u32 1536, %s1829_s21  ;;  %s2325_s8 = sld [smem:[#allocation21_spill]] }
  0xb6   : > { %1418 = vmatpush3.bf16.msra.mxu0 %v1577_v1  ;;  %1434 = vmatpush3.bf16.msra.mxu1 %v1578_v2  ;;  %v1584_v8 = vld [vmem:[%s321_s27 + $0x18] sm:$0xff]   ;;  %v1586_v10 = vld [vmem:[#allocation2 + $0x20] sm:$0xff]   ;;  %v1587_v12 = vld [vmem:[#allocation2 + $0x8] sm:$0xff]   ;;  %s2195_s5 = scalar_lea.vmem [#allocation10], %s1473_s28  ;;  %s1049_s2 = scalar_lea.sflag [#allocation4], %s2164_s25 }
  0xb7   : > { %1419 = vmatprep.subr.bf16.mxu0 %v1579_v3  ;;  %1435 = vmatprep.subr.bf16.mxu1 %v1580_v4  ;;  %v1589_v11 = vld [vmem:[%s330_s24] sm:$0xff]   ;;  %v1588_v13 = vld [vmem:[#allocation2 + $0x28] sm:$0xff]   ;;  %v1591_v15 = vld [vmem:[#allocation2 + $0x10] sm:$0xff]   ;;  %s1063_s17 = sshll.u32 %s2195_s5, 4  ;;  %p2326_p13 = scmp.ne.s32.totalorder %s2300_s29, 0  ;;  %s2215_s17 = int_to_ptr.vmem [resolvable:$true] %s1063_s17 }
  0xb8   : > { %1425 = vmatprep.mubr.msk.bf16.mxu0 %vm476_vm0, %v1585_v9  ;;  %1441 = vmatprep.mubr.msk.bf16.mxu1 %vm476_vm0, %v1586_v10  ;;  %v1590_v14 = vld [vmem:[%s330_s24 + $0x8] sm:$0xff]   ;;  %v1592_v16 = vld [vmem:[#allocation2 + $0x30] sm:$0xff]   ;;  %v1593_v18 = vld [vmem:[#allocation2 + $0x18] sm:$0xff]   ;;  %s1747_s13 = scalar_lea.vmem %s2215_s17, 1536  ;;  %s1849_s22 = smov [#allocation10]  }
  0xb9   : > { %v1595_v17 = vld [vmem:[%s330_s24 + $0x10] sm:$0xff]   ;;  %v1594_v19 = vld [vmem:[#allocation2 + $0x38] sm:$0xff]   ;;  %v384_v21 = vld [vmem:[#allocation5] sm:$0xff]  ;;  %p1748_p11 = scmp.ne.s32.totalorder %s2215_s17, %s1747_s13  ;;  %s1751_s26 = sshll.u32 %s1849_s22, 4  ;;  %s1752_s26 = int_to_ptr.vmem [resolvable:$false] %s1751_s26 }
  0xba   : > { %1420 = vmatpush3.bf16.msra.mxu0 %v1579_v3  ;;  %1436 = vmatpush3.bf16.msra.mxu1 %v1580_v4  ;;  %v386_v20 = vld [vmem:[#allocation5 + $0x10] sm:$0xff]  ;;  %v1596_v22 = vld [vmem:[%s330_s24 + $0x18] sm:$0xff]   ;;  %v1597_v23 = vld [vmem:[#allocation2 + $0x40] sm:$0xff]   ;;  %s1753_s7 = scalar_lea.vmem %s1752_s26, 3072  ;;  %p1754_p4 = scmp.lt.s32.totalorder %s2215_s17, %s1752_s26 }
  0xbb   : > { %1421 = vmatprep.subr.bf16.mxu0 %v1581_v5  ;;  %1437 = vmatprep.subr.bf16.mxu1 %v1582_v6  ;;  %v1598_v24 = vld [vmem:[#allocation2 + $0x50] sm:$0xff]   ;;  %v387_v25 = vld [vmem:[#allocation5 + $0x18] sm:$0xff]  ;;  %v385_v26 = vld [vmem:[#allocation5 + $0x8] sm:$0xff]  ;;  %s2213_s9 = scalar_lea.hbm %s2325_s8, %s1474_s0  ;;  %p1749_p1 = pnand %p1748_p11, %p2326_p13 }
  0xbc   : > { %404 = vperm.xlu1 %1576, %v386_v20   ;;  %394 = vperm.xlu0 %1575, %v384_v21   ;;  %v1600_v27 = vld [vmem:[#allocation2 + $0x48] sm:$0xff]   ;;  %v1599_v28 = vld [vmem:[#allocation2 + $0x58] sm:$0xff]   ;;  %v388_v30 = vld [vmem:[#allocation5 + $0x20] sm:$0xff]  ;;  %p1755_p12 = scmp.lt.s32.totalorder %s1753_s7, %s1747_s13 }
  0xbd   : > { %v389_v29 = vld [vmem:[#allocation5 + $0x28] sm:$0xff]  ;;  %v391_v31 = vld [vmem:[#allocation5 + $0x38] sm:$0xff]  ;;  %v390_v32 = vld [vmem:[#allocation5 + $0x30] sm:$0xff]  ;;  %p1750_p5 = pneg %p1749_p1 }
  0xbe   : > { %1422 = vmatpush3.bf16.msra.mxu0 %v1581_v5  ;;  %1438 = vmatpush3.bf16.msra.mxu1 %v1582_v6  ;;  %v613_v33 = vld [vmem:[#allocation5 + $0x48] sm:$0xff]  ;;  %v612_v34 = vld [vmem:[#allocation5 + $0x40] sm:$0xff]  ;;  %v615_v35 = vld [vmem:[#allocation5 + $0x58] sm:$0xff]  ;;  %p1756_p10 = por %p1755_p12, %p1754_p4 }
  0xbf   : > { %1423 = vmatprep.subr.bf16.mxu0 %v1583_v7  ;;  %1439 = vmatprep.subr.bf16.mxu1 %v1584_v8  ;;  %v614_v36 = vld [vmem:[#allocation5 + $0x50] sm:$0xff]  ;;  %v617_v37 = vld [vmem:[#allocation5 + $0x68] sm:$0xff]  ;;  %v616_v38 = vld [vmem:[#allocation5 + $0x60] sm:$0xff] }
  0xc0   : > { %409 = vperm.xlu1 %1576, %v387_v25   ;;  %399 = vperm.xlu0 %1575, %v385_v26   ;;  %v619_v39 = vld [vmem:[#allocation5 + $0x78] sm:$0xff]  ;;  %v618_v40 = vld [vmem:[#allocation5 + $0x70] sm:$0xff]  ;;  %v840_v41 = vld [vmem:[#allocation5 + $0x88] sm:$0xff]  ;;  %p1757_p3 = pnand %p1756_p10, %p1750_p5 }
  0xc1   : > { %v839_v42 = vld [vmem:[#allocation5 + $0x80] sm:$0xff]  ;;  %v842_v43 = vld [vmem:[#allocation5 + $0x98] sm:$0xff]  ;;  %v841_v44 = vld [vmem:[#allocation5 + $0x90] sm:$0xff] }
  0xc2   : > { %1424 = vmatpush3.bf16.msra.mxu0 %v1583_v7  ;;  %1440 = vmatpush3.bf16.msra.mxu1 %v1584_v8  ;;  %v844_v45 = vld [vmem:[#allocation5 + $0xa8] sm:$0xff]  ;;  %v843_v46 = vld [vmem:[#allocation5 + $0xa0] sm:$0xff]  ;;  %v846_v47 = vld [vmem:[#allocation5 + $0xb8] sm:$0xff] }
  0xc3   : > { %1449 = vmatprep.subr.bf16.mxu0 %v1589_v11  ;;  %1465 = vmatprep.subr.bf16.mxu1 %v1589_v11  ;;  %v845_v48 = vld [vmem:[#allocation5 + $0xb0] sm:$0xff] }
  0xc4   : > { %419 = vperm.xlu1 %1576, %v389_v29   ;;  %414 = vperm.xlu0 %1575, %v388_v30  }
  0xc5   : > { %1426 = vmatmul.mubr.msk.bf16.vlgmr.msra.gmra.mrb[0].mxu0 %vm476_vm0, %v1587_v12  ;;  %1442 = vmatmul.mubr.msk.bf16.vlgmr.msra.gmra.mrb[0].mxu1 %vm476_vm0, %v1588_v13 }
  0xc6   : > { %1450 = vmatpush3.bf16.msra.mxu0 %v1589_v11  ;;  %1469 = vmatpush3.bf16.msra.mxu1 %v1589_v11 }
  0xc7   : > { %1451 = vmatprep.subr.bf16.mxu0 %v1590_v14  ;;  %1466 = vmatprep.subr.bf16.mxu1 %v1590_v14 }
  0xc8   : > { %1429 = vmatprep.mubr.msk.bf16.mxu0 %vm476_vm0, %v1591_v15  ;;  %1445 = vmatprep.mubr.msk.bf16.mxu1 %vm476_vm0, %v1592_v16 }
  0xc9   : > { %429 = vperm.xlu1 %1576, %v391_v31   ;;  %424 = vperm.xlu0 %1575, %v390_v32  }
  0xca   : > { %1452 = vmatpush3.bf16.msra.mxu0 %v1590_v14  ;;  %1470 = vmatpush3.bf16.msra.mxu1 %v1590_v14 }
  0xcb   : > { %1453 = vmatprep.subr.bf16.mxu0 %v1595_v17  ;;  %1467 = vmatprep.subr.bf16.mxu1 %v1595_v17 }
  0xcd   : > { %1430 = vmatmul.mubr.msk.bf16.gmra.mrb[4].mxu0 %vm476_vm0, %v1593_v18  ;;  %1446 = vmatmul.mubr.msk.bf16.gmra.mrb[4].mxu1 %vm476_vm0, %v1594_v19 }
  0xce   : > { %1454 = vmatpush3.bf16.msra.mxu0 %v1595_v17  ;;  %1471 = vmatpush3.bf16.msra.mxu1 %v1595_v17 }
  0xcf   : > { %1455 = vmatprep.subr.bf16.mxu0 %v1596_v22  ;;  %1468 = vmatprep.subr.bf16.mxu1 %v1596_v22 }
  0xd0   : > { %1457 = vmatprep.mubr.msk.bf16.mxu0 %vm476_vm0, %v1597_v23  ;;  %1461 = vmatprep.mubr.msk.bf16.mxu1 %vm476_vm0, %v1598_v24 }
  0xd1   : > { %627 = vperm.xlu1 %1576, %v613_v33   ;;  %622 = vperm.xlu0 %1575, %v612_v34  }
  0xd2   : > { %1456 = vmatpush3.bf16.msra.mxu0 %v1596_v22  ;;  %1472 = vmatpush3.bf16.msra.mxu1 %v1596_v22 }
  0xd5   : > { %1458 = vmatmul.mubr.msk.bf16.vlgmr.msra.gmra.mrb[8].mxu0 %vm476_vm0, %v1600_v27  ;;  %1462 = vmatmul.mubr.msk.bf16.vlgmr.msra.gmra.mrb[8].mxu1 %vm476_vm0, %v1599_v28 }
  0xd6   : > { %637 = vperm.xlu1 %1576, %v615_v35   ;;  %632 = vperm.xlu0 %1575, %v614_v36  }
  0xda   : > { %647 = vperm.xlu1 %1576, %v617_v37   ;;  %642 = vperm.xlu0 %1575, %v616_v38  }
  0xde   : > { %657 = vperm.xlu1 %1576, %v619_v39   ;;  %652 = vperm.xlu0 %1575, %v618_v40  }
  0xe2   : > { %854 = vperm.xlu1 %1576, %v840_v41   ;;  %849 = vperm.xlu0 %1575, %v839_v42  }
  0xe6   : > { %864 = vperm.xlu1 %1576, %v842_v43   ;;  %859 = vperm.xlu0 %1575, %v841_v44  }
  0xea   : > { %874 = vperm.xlu1 %1576, %v844_v45   ;;  %869 = vperm.xlu0 %1575, %v843_v46  }
  0xee   : > { %884 = vperm.xlu1 %1576, %v846_v47   ;;  %879 = vperm.xlu0 %1575, %v845_v48  }
 0x13b   : > { %v405_v49 = vpop.permute.xlu1 %404  ;;  %v395_v50 = vpop.permute.xlu0 %394 }
 0x13f   : > { %v410_v51 = vpop.permute.xlu1 %409  ;;  %v400_v52 = vpop.permute.xlu0 %399 }
 0x143   : > { %v420_v53 = vpop.permute.xlu1 %419  ;;  %v415_v54 = vpop.permute.xlu0 %414 }
 0x148   : > { %v430_v55 = vpop.permute.xlu1 %429  ;;  %v425_v56 = vpop.permute.xlu0 %424 }
 0x150   : > { %v628_v57 = vpop.permute.xlu1 %627  ;;  %v623_v58 = vpop.permute.xlu0 %622 }
 0x155   : > { %v638_v59 = vpop.permute.xlu1 %637  ;;  %v633_v60 = vpop.permute.xlu0 %632 }
 0x159   : > { %v648_v61 = vpop.permute.xlu1 %647  ;;  %v643_v62 = vpop.permute.xlu0 %642 }
 0x15d   : > { %v658_v63 = vpop.permute.xlu1 %657  ;;  %v653_v0 = vpop.permute.xlu0 %652 }
 0x161   : > { %v2188_v1 = vpop.permute.xlu1 %854  ;;  %v2190_v2 = vpop.permute.xlu0 %849 }
 0x165   : > { %v2192_v3 = vpop.permute.xlu1 %864  ;;  %v860_v4 = vpop.permute.xlu0 %859 }
 0x169   : > { %v875_v24 = vpop.permute.xlu1 %874  ;;  %v870_v26 = vpop.permute.xlu0 %869 }
 0x16d   : > { %v885_v46 = vpop.permute.xlu1 %884  ;;  %v880_v48 = vpop.permute.xlu0 %879 }
 0x198   : > { %v1427_v5 = vpop.f32.mrb[0].mxu0  ;;  %v1443_v6 = vpop.f32.mrb[0].mxu1 }
 0x199   : > { %v523_v7 = vpop.f32.mrb[1].mxu0  ;;  %v750_v8 = vpop.f32.mrb[1].mxu1  ;;  %v532_v10 = vadd.f32 %v1427_v5, %v405_v49  ;;  %v759_v14 = vadd.f32 %v1443_v6, %v633_v60 }
 0x19a   : > { %v1428_v9 = vpop.f32.mrb[2].mxu0  ;;  %v1444_v12 = vpop.f32.mrb[2].mxu1  ;;  %v524_v15 = vadd.f32 %v523_v7, %v395_v50  ;;  %v751_v19 = vadd.f32 %v750_v8, %v623_v58 }
 0x19b   : > { %v535_v11 = vadd.f32 %v1428_v9, %v410_v51  ;;  %v526_v13 = vpop.f32.mrb[3].mxu0  ;;  %v762_v16 = vadd.f32 %v1444_v12, %v638_v59  ;;  %v753_v18 = vpop.f32.mrb[3].mxu1 }
 0x19c   : > { %v527_v17 = vadd.f32 %v526_v13, %v400_v52  ;;  %v754_v21 = vadd.f32 %v753_v18, %v628_v57 }
 0x19d   : > { %v1330_v20 = vpack.c.bf16 %v535_v11, %v532_v10  ;;  %v1350_v22 = vpack.c.bf16 %v762_v16, %v759_v14 }
 0x19e   : > { %v1325_v23 = vpack.c.bf16 %v527_v17, %v524_v15  ;;  %v1345_v25 = vpack.c.bf16 %v754_v21, %v751_v19 }
 0x19f   : > { %1382 = vst [vmem:[%s2195_s5 + $0x8] sm:$0xff] %v1330_v20   ;;  %1386 = vst [vmem:[%s2195_s5 + $0x28] sm:$0xff] %v1350_v22  }
 0x1a0   : > { %1326 = vst [vmem:[%s2195_s5] sm:$0xff] %v1325_v23   ;;  %v1431_v27 = vpop.f32.mrb[4].mxu0  ;;  %1385 = vst [vmem:[%s2195_s5 + $0x20] sm:$0xff] %v1345_v25   ;;  %v1447_v28 = vpop.f32.mrb[4].mxu1 }
 0x1a1   : > { %v539_v29 = vpop.f32.mrb[5].mxu0  ;;  %v766_v30 = vpop.f32.mrb[5].mxu1  ;;  %v548_v32 = vadd.f32 %v1431_v27, %v425_v56  ;;  %v775_v36 = vadd.f32 %v1447_v28, %v653_v0 }
 0x1a2   : > { %v1432_v31 = vpop.f32.mrb[6].mxu0  ;;  %v1448_v34 = vpop.f32.mrb[6].mxu1  ;;  %v540_v37 = vadd.f32 %v539_v29, %v415_v54  ;;  %v767_v41 = vadd.f32 %v766_v30, %v643_v62 }
 0x1a3   : > { %v551_v33 = vadd.f32 %v1432_v31, %v430_v55  ;;  %v542_v35 = vpop.f32.mrb[7].mxu0  ;;  %v778_v38 = vadd.f32 %v1448_v34, %v658_v63  ;;  %v769_v40 = vpop.f32.mrb[7].mxu1 }
 0x1a4   : > { %v543_v39 = vadd.f32 %v542_v35, %v420_v53  ;;  %v770_v43 = vadd.f32 %v769_v40, %v648_v61 }
 0x1a5   : > { %v1340_v42 = vpack.c.bf16 %v551_v33, %v548_v32  ;;  %v1360_v44 = vpack.c.bf16 %v778_v38, %v775_v36 }
 0x1a6   : > { %v1335_v45 = vpack.c.bf16 %v543_v39, %v540_v37  ;;  %v1355_v47 = vpack.c.bf16 %v770_v43, %v767_v41 }
 0x1a7   : > { %1384 = vst [vmem:[%s2195_s5 + $0x18] sm:$0xff] %v1340_v42   ;;  %1388 = vst [vmem:[%s2195_s5 + $0x38] sm:$0xff] %v1360_v44  }
 0x1a8   : > { %1383 = vst [vmem:[%s2195_s5 + $0x10] sm:$0xff] %v1335_v45   ;;  %v1459_v49 = vpop.f32.mrb[8].mxu0  ;;  %1387 = vst [vmem:[%s2195_s5 + $0x30] sm:$0xff] %v1355_v47   ;;  %v1463_v50 = vpop.f32.mrb[8].mxu1 }
 0x1a9   : > { %v977_v51 = vpop.f32.mrb[9].mxu0  ;;  %v993_v52 = vpop.f32.mrb[9].mxu1  ;;  %v986_v54 = vadd.f32 %v1459_v49, %v860_v4  ;;  %v1002_v58 = vadd.f32 %v1463_v50, %v880_v48 }
 0x1aa   : > { %v1460_v53 = vpop.f32.mrb[10].mxu0  ;;  %v1464_v56 = vpop.f32.mrb[10].mxu1  ;;  %v978_v59 = vadd.f32 %v977_v51, %v2190_v2  ;;  %v994_v63 = vadd.f32 %v993_v52, %v870_v26 }
 0x1ab   : > { %v989_v55 = vadd.f32 %v1460_v53, %v2192_v3  ;;  %v980_v57 = vpop.f32.mrb[11].mxu0  ;;  %v1005_v60 = vadd.f32 %v1464_v56, %v885_v46  ;;  %v996_v62 = vpop.f32.mrb[11].mxu1 }
 0x1ac   : > { %v981_v61 = vadd.f32 %v980_v57, %v2188_v1  ;;  %v997_v4 = vadd.f32 %v996_v62, %v875_v24 }
 0x1ad   : > { %v1370_v0 = vpack.c.bf16 %v989_v55, %v986_v54  ;;  %v1380_v3 = vpack.c.bf16 %v1005_v60, %v1002_v58 }
 0x1ae   : > { %v1365_v5 = vpack.c.bf16 %v981_v61, %v978_v59  ;;  %v1375_v2 = vpack.c.bf16 %v997_v4, %v994_v63 }
 0x1af   : > { %1390 = vst [vmem:[%s2195_s5 + $0x48] sm:$0xff] %v1370_v0   ;;  %1392 = vst [vmem:[%s2195_s5 + $0x58] sm:$0xff] %v1380_v3  }
 0x1b0   : > { %1389 = vst [vmem:[%s2195_s5 + $0x40] sm:$0xff] %v1365_v5   ;;  %1391 = vst [vmem:[%s2195_s5 + $0x50] sm:$0xff] %v1375_v2  }
 0x1b1   : > { %1760 = shalt.err (!%p1757_p3)
}
 0x1b2   : > { %s1761_s11 = scalar_lea.hbm %s2213_s9, 1536  ;;  %s1765_s10 = scalar_lea.hbm %s2325_s8, 3072 }
 0x1b3   : > { %p1762_p8 = scmp.ne.s32.totalorder %s2213_s9, %s1761_s11  ;;  %p1766_p0 = scmp.lt.u32.totalorder %s2213_s9, %s2325_s8 }
 0x1b4   : > { %p1767_p6 = scmp.lt.u32.totalorder %s1765_s10, %s1761_s11  ;;  %p1769_p11 = scmp.lt.u32.totalorder %s1761_s11, %s2213_s9 }
 0x1b5   : > { %p1763_p7 = pnand %p1762_p8, %p2326_p13 }
 0x1b6   : > { %p1768_p2 = por %p1767_p6, %p1766_p0 }
 0x1b7   : > { %p1764_p9 = pneg %p1763_p7 }
 0x1b8   : > { %p1770_p1 = por %p1769_p11, %p1768_p2 }
 0x1ba   : > { %p1771_p5 = pnand %p1770_p1, %p1764_p9 }
 0x1bc   : > { %1774 = shalt.err (!%p1771_p5)
}
 0x1bd   : > { %s1850_s14 = smov 64   ;;  %s1851_s27 = smov 4  }
 0x1be   : > { %1489 = dma.vmem_to_hbm [thread:$0]  (%p2326_p13), %s2215_s17, 1536, %s2213_s9, %s1049_s2, %s1850_s14, %s1850_s14, %s1851_s27  }
 0x1bf PF: > { %s2327_s24 = sld [smem:[#allocation15_spill]]  ;;  %s2328_s28 = sld [smem:[#allocation17_spill]] }
 0x1c0   : > { %p2330_p12 = scmp.ge.s32.totalorder %s1837_s23, 2 }
 0x1c5   : > { %s1078_s5 = sand.u32 1, %s2327_s24   ;;  %p2329_p4 = scmp.ne.s32.totalorder %s2328_s28, 0 }
 0x1c6   : > { %s1079_s0 = scalar_lea.sflag [#allocation4], %s1078_s5 }
 0x1c7   : > { %p1509_p10 = pnand %p2330_p12, %p2329_p4 }
 0x1c9   : > { %1812 = dma.done.wait (!%p1509_p10), %s1079_s0, 1536  }
 0x1ca   : > { %1814 = vsyncadd (!%p1509_p10), %s1079_s0, 4294965760  ;;  %s20_s23 = sadd.s32 1, %s1837_s23   ;;  %s2331_s21 = sld [smem:[#allocation16_spill]] }
 0x1cb   : > { %p17_p3 = scmp.ge.s32.totalorder %s20_s23, 4   ;;  %s2332_s22 = sld [smem:[#allocation18_spill]] }
 0x1cc   : > { %s2333_s18 = smov %s1821_s19  ;;  %s2334_s19 = smov %s1825_s20 }
 0x1cd   : > { %s2335_s20 = smov %s2018_s15  ;;  %19 = sbr.rel (!%p17_p3) target bundleno = 10 (0xa), region = 118 }
 0x1d4   :  { %1084 = vsyncpa [#allocation3], 1 }
 0x1d5   :  { %1086 = vsyncpa [#allocation3 + $0x1], 1 }
 0x1d6   :  { %1087 = vsyncpa [#allocation6], 1 }
 0x1d7   :  { %1088 = vsyncpa [#allocation4], 1 }
 0x1d8   :  { %1090 = vsyncpa [#allocation4 + $0x1], 1 }

</bundles_post_ra>
